<compile_context>
chip_gen: v5e
topology: v5e:2x2
jax: 0.10.0
libtpu: 0.0.40
codegen_flags: <defaults>
</compile_context>

<pallas_src>
import jax
import jax.numpy as jnp
from jax.experimental import pallas as pl
from jax.experimental.pallas import tpu as pltpu

N_EMBD = 64
HIDDEN = 4 * N_EMBD  # 256


def ffn_kernel(x_ref, w1_ref, b1_ref, w2_ref, b2_ref, o_ref):
    # x_ref: (RBLK, C) f32 ; w1/w2: bf16 ; b1/b2: f32 ; o_ref: (RBLK, C) f32
    x = x_ref[...]

    # Linear(C -> 4C) + ReLU.  bf16 operands run at full MXU rate on every
    # generation; accumulation stays f32.
    h = jnp.dot(x.astype(jnp.bfloat16), w1_ref[...],
                preferred_element_type=jnp.float32) + b1_ref[...]
    h = jnp.maximum(h, 0.0)

    # Linear(4C -> C).
    y = jnp.dot(h.astype(jnp.bfloat16), w2_ref[...],
                preferred_element_type=jnp.float32) + b2_ref[...]

    # Dropout: identity in eval mode.
    o_ref[...] = y


def _round_up(n, m):
    return ((n + m - 1) // m) * m


def feed_forward(x, params):
    B, T, C = x.shape
    assert C == N_EMBD
    rows = B * T
    xr = x.reshape(rows, C)

    # Row block: sublane-aligned (multiple of 8), sized so the grid has >= 2
    # steps when enough rows are available (feeds both v7x TCs), capped so the
    # per-step working set stays comfortably inside VMEM for large inputs.
    row_block = _round_up(max(8, -(-rows // 2)), 8)
    row_block = min(row_block, 1024)
    padded_rows = pl.cdiv(rows, row_block) * row_block
    if padded_rows != rows:
        xr = jnp.pad(xr, ((0, padded_rows - rows), (0, 0)))
    grid = (padded_rows // row_block,)

    # bf16 weights halve the dominant HBM traffic; biases stay f32.
    w1 = params["w1"].astype(jnp.bfloat16)
    w2 = params["w2"].astype(jnp.bfloat16)
    b1 = params["b1"].astype(jnp.float32)
    b2 = params["b2"].astype(jnp.float32)

    def full_spec(arr):
        ndim = arr.ndim
        # Constant block index -> weight block stays resident across the grid.
        return pl.BlockSpec(arr.shape, lambda i, _n=ndim: (0,) * _n)

    out = pl.pallas_call(
        ffn_kernel,
        out_shape=jax.ShapeDtypeStruct((padded_rows, C), jnp.float32),
        grid_spec=pltpu.PrefetchScalarGridSpec(
            num_scalar_prefetch=0,
            grid=grid,
            in_specs=[pl.BlockSpec((row_block, C), lambda i: (i, 0)),
                      full_spec(w1), full_spec(b1),
                      full_spec(w2), full_spec(b2)],
            out_specs=pl.BlockSpec((row_block, C), lambda i: (i, 0)),
        ),
        compiler_params=pltpu.CompilerParams(
            dimension_semantics=("parallel",)),
    )(xr, w1, b1, w2, b2)

    return out[:rows].reshape(B, T, C)


# ---------------- pure-JAX reference (f32) ----------------
def reference_ffn(x, p):
    h = jnp.maximum(x @ p["w1"] + p["b1"], 0.0)
    return h @ p["w2"] + p["b2"]


def init_params(key):
    k1, k2 = jax.random.split(key)
    s = 0.02
    return {
        "w1": jax.random.normal(k1, (N_EMBD, HIDDEN), jnp.float32) * s,
        "b1": jnp.zeros((1, HIDDEN), jnp.float32),
        "w2": jax.random.normal(k2, (HIDDEN, N_EMBD), jnp.float32) * s,
        "b2": jnp.zeros((1, N_EMBD), jnp.float32),
    }


if __name__ == "__main__":
    key = jax.random.PRNGKey(0)
    kx, kp = jax.random.split(key)
    B, T = 2, 8                          # small shapes consistent with the module
    x = jax.random.normal(kx, (B, T, N_EMBD), jnp.float32)
    params = init_params(kp)

    out = feed_forward(x, params)
    out = jax.block_until_ready(out)

    ref = jax.block_until_ready(reference_ffn(x, params))
    assert out.shape == (B, T, N_EMBD)
    assert jnp.allclose(out, ref, atol=1e-2, rtol=1e-2)

    print("KERNEL_OK")
</pallas_src>

<mosaic_0001>
module attributes {stable_mosaic.version = 11 : i64} {
  func.func @ffn_kernel(%arg0: i32, %arg1: memref<8x64xf32, #tpu.memory_space<vmem>>, %arg2: memref<64x256xbf16, #tpu.memory_space<vmem>>, %arg3: memref<1x256xf32, #tpu.memory_space<vmem>>, %arg4: memref<256x64xbf16, #tpu.memory_space<vmem>>, %arg5: memref<1x64xf32, #tpu.memory_space<vmem>>, %arg6: memref<8x64xf32, #tpu.memory_space<vmem>>) attributes {dimension_semantics = [#tpu.dimension_semantics<parallel>], iteration_bounds = array<i64: 2>, scalar_prefetch = 0 : i64, scratch_operands = 0 : i64, tpu.core_type = #tpu.core_type<tc>, window_params = [{transform_indices = @transform_0, window_bounds = array<i64: 8, 64>}, {pipeline_mode = #tpu.pipeline_mode<synchronous>, transform_indices = @transform_1, window_bounds = array<i64: 64, 256>}, {pipeline_mode = #tpu.pipeline_mode<synchronous>, transform_indices = @transform_2, window_bounds = array<i64: 1, 256>}, {pipeline_mode = #tpu.pipeline_mode<synchronous>, transform_indices = @transform_3, window_bounds = array<i64: 256, 64>}, {pipeline_mode = #tpu.pipeline_mode<synchronous>, transform_indices = @transform_4, window_bounds = array<i64: 1, 64>}, {transform_indices = @transform_5, window_bounds = array<i64: 8, 64>}]} {
    %c0 = arith.constant 0 : index
    %c0_0 = arith.constant 0 : index
    %0 = vector.load %arg1[%c0, %c0_0] : memref<8x64xf32, #tpu.memory_space<vmem>>, vector<8x64xf32>
    %1 = arith.truncf %0 : vector<8x64xf32> to vector<8x64xbf16>
    %c0_1 = arith.constant 0 : index
    %c0_2 = arith.constant 0 : index
    %2 = vector.load %arg2[%c0_1, %c0_2] : memref<64x256xbf16, #tpu.memory_space<vmem>>, vector<64x256xbf16>
    %cst = arith.constant dense<0.000000e+00> : vector<8x256xf32>
    %3 = tpu.matmul %1, %2, %cst {dimension_numbers = #tpu.dot_dimension_numbers<[1], [0], [0], [1], [0, 0, 1, 1], [], []>} : vector<8x64xbf16>, vector<64x256xbf16>, vector<8x256xf32> -> vector<8x256xf32>
    %c0_3 = arith.constant 0 : index
    %c0_4 = arith.constant 0 : index
    %4 = vector.load %arg3[%c0_3, %c0_4] : memref<1x256xf32, #tpu.memory_space<vmem>>, vector<1x256xf32>
    %5 = vector.broadcast %4 : vector<1x256xf32> to vector<8x256xf32>
    %6 = arith.addf %3, %5 : vector<8x256xf32>
    %cst_5 = arith.constant 0.000000e+00 : f32
    %7 = vector.broadcast %cst_5 : f32 to vector<8x256xf32>
    %8 = arith.maximumf %6, %7 : vector<8x256xf32>
    %9 = arith.truncf %8 : vector<8x256xf32> to vector<8x256xbf16>
    %c0_6 = arith.constant 0 : index
    %c0_7 = arith.constant 0 : index
    %10 = vector.load %arg4[%c0_6, %c0_7] : memref<256x64xbf16, #tpu.memory_space<vmem>>, vector<256x64xbf16>
    %cst_8 = arith.constant dense<0.000000e+00> : vector<8x64xf32>
    %11 = tpu.matmul %9, %10, %cst_8 {dimension_numbers = #tpu.dot_dimension_numbers<[1], [0], [0], [1], [0, 0, 1, 1], [], []>} : vector<8x256xbf16>, vector<256x64xbf16>, vector<8x64xf32> -> vector<8x64xf32>
    %c0_9 = arith.constant 0 : index
    %c0_10 = arith.constant 0 : index
    %12 = vector.load %arg5[%c0_9, %c0_10] : memref<1x64xf32, #tpu.memory_space<vmem>>, vector<1x64xf32>
    %13 = vector.broadcast %12 : vector<1x64xf32> to vector<8x64xf32>
    %14 = arith.addf %11, %13 : vector<8x64xf32>
    %c0_11 = arith.constant 0 : index
    %c0_12 = arith.constant 0 : index
    %15 = vector.load %arg6[%c0_11, %c0_12] : memref<8x64xf32, #tpu.memory_space<vmem>>, vector<8x64xf32>
    tpu.vector_store %arg6[%c0_11, %c0_12], %14 {strides = array<i32>} : memref<8x64xf32, #tpu.memory_space<vmem>>, vector<8x64xf32>,
    return
  }
  func.func @transform_0(%arg0: i32) -> (i32, i32) {
    %c0_i32 = arith.constant 0 : i32
    %c0_i32_0 = arith.constant 0 : i32
    return %arg0, %c0_i32 : i32, i32
  }
  func.func @transform_1(%arg0: i32) -> (i32, i32) {
    %c0_i32 = arith.constant 0 : i32
    %c0_i32_0 = arith.constant 0 : i32
    %c0_i32_1 = arith.constant 0 : i32
    return %c0_i32, %c0_i32_0 : i32, i32
  }
  func.func @transform_2(%arg0: i32) -> (i32, i32) {
    %c0_i32 = arith.constant 0 : i32
    %c0_i32_0 = arith.constant 0 : i32
    %c0_i32_1 = arith.constant 0 : i32
    return %c0_i32, %c0_i32_0 : i32, i32
  }
  func.func @transform_3(%arg0: i32) -> (i32, i32) {
    %c0_i32 = arith.constant 0 : i32
    %c0_i32_0 = arith.constant 0 : i32
    %c0_i32_1 = arith.constant 0 : i32
    return %c0_i32, %c0_i32_0 : i32, i32
  }
  func.func @transform_4(%arg0: i32) -> (i32, i32) {
    %c0_i32 = arith.constant 0 : i32
    %c0_i32_0 = arith.constant 0 : i32
    %c0_i32_1 = arith.constant 0 : i32
    return %c0_i32, %c0_i32_0 : i32, i32
  }
  func.func @transform_5(%arg0: i32) -> (i32, i32) {
    %c0_i32 = arith.constant 0 : i32
    %c0_i32_0 = arith.constant 0 : i32
    return %arg0, %c0_i32 : i32, i32
  }
}

</mosaic_0001>

<bundles_post_ra>
// kernel: tpu_custom_call.1
= control target key start
LH: loop header
LB: loop body
LE: loop exit
PB: predicated region body
PF: predicated region fallthrough
CT: control target
= control target key end

     0   :  { %10 = vsyncpa [#allocation3], 0  ;;  %s1001_s0 = inlined_call_operand.vmem [shape: f32[16,64], index: 0, kind: input, shape index: {}]   ;;  %s1002_s1 = inlined_call_operand.vmem [shape: bf16[64,256], index: 1, kind: input, shape index: {}]   ;;  %s1003_s2 = inlined_call_operand.vmem [shape: f32[1,256], index: 2, kind: input, shape index: {}]   ;;  %s1004_s3 = inlined_call_operand.vmem [shape: bf16[256,64], index: 3, kind: input, shape index: {}]   ;;  %s1005_s4 = inlined_call_operand.vmem [shape: f32[1,64], index: 4, kind: input, shape index: {}]   ;;  %s1006_s5 = inlined_call_operand.hbm [shape: f32[16,64], index: 5, kind: output, shape index: {}]  }
   0x1   :  { %12 = vsyncpa [#allocation3 + $0x1], 0  ;;  %s811_s18 = smov 0   ;;  %s813_s19 = smov 0  }
   0x2   :  { %s815_s20 = smov 0   ;;  %s817_s21 = smov 0  }
   0x3 LB: > { %s832_s22 = sadd.s32 4294967295, %s779_s21   ;;  %s545_s23 = sadd.s32 4294967294, %s779_s21   ;;  %s779_s21 = sphi %s817_s21, %s1012_s21   ;;  %s775_s20 = sphi %s815_s20, %s1011_s20   ;;  %s771_s19 = sphi %s813_s19, %s1010_s19   ;;  %s767_s18 = sphi %s811_s18, %s1009_s18  }
   0x4   : > { %s836_s24 = sadd.s32 1, %s779_s21   ;;  %s135_s25 = sadd.s32 1, %s775_s20 }
   0x5   : > { %s132_s26 = ssub.s32 %s779_s21, %s836_s24  ;;  %p145_p0 = scmp.ne.s32.totalorder %s775_s20, %s771_s19 }
   0x6   : > { %p133_p1 = scmp.eq.s32.totalorder %s132_s26, 0  ;;  %p146_p2 = scmp.eq.s32.totalorder %s832_s22, 1 }
   0x7   : > { %p151_p3 = scmp.ne.s32.totalorder %s771_s19, %s767_s18  ;;  %p152_p4 = scmp.eq.s32.totalorder %s545_s23, 1 }
   0x8   : > { %s847_s27 = scalar_select %p133_p1, %s775_s20, %s135_s25  }
   0x9   : > { %p849_p5 = por %p146_p2, %p145_p0  ;;  %p853_p6 = por %p152_p4, %p151_p3 }
   0xa   : > { %p548_p7 = scmp.ge.s32.totalorder %s779_s21, 1  ;;  %p189_p8 = scmp.lt.s32.totalorder %s779_s21, 3 }
   0xc   : > { %p190_p9 = pnand %p548_p7, %p189_p8 }
   0xd   : > { %p216_p10 = scmp.lt.s32.totalorder (!%p190_p9), %s832_s22, 1  ;;  %s213_s12 = sand.u32 (!%p190_p9), 1, %s771_s19  }
   0xe   : > { %193 = sbr.rel (%p190_p9) target bundleno = 310 (0x136), region = 40  ;;  %s549_s13 = sshll.u32 (!%p190_p9), %s213_s12, 3 }
   0xf   : > { %s215_s30 = scalar_lea.vmem (!%p190_p9), [#allocation2], %s549_s13  ;;  %s737_s11 = scalar_lea.hbm (!%p190_p9), %s1006_s5, 16 }
  0x10   : > { %s483_s6 = sshll.u32 (!%p190_p9), %s215_s30, 4  ;;  %s484_s6 = int_to_ptr.vmem [resolvable:$true] %s483_s6 }
  0x13   : > { %v577_v0 = vld [vmem:[%s1002_s1 + $0x30] sm:$0xf]  ;;  %v660_v1 = vld [vmem:[%s1002_s1 + $0x34] sm:$0xf0]  ;;  %v659_v2 = vld [vmem:[%s1002_s1 + $0x34] sm:$0xf] }
  0x14   : > { %v578_v3 = vor.u32 %v660_v1, %v577_v0  ;;  %v579_v4 = vld [vmem:[%s1002_s1 + $0x38] sm:$0xf0]  ;;  %v569_v5 = vld [vmem:[%s1002_s1 + $0x20] sm:$0xf]  ;;  %v658_v6 = vld [vmem:[%s1002_s1 + $0x24] sm:$0xf0] }
  0x15   : > { %v582_v7 = vor.u32 %v659_v2, %v579_v4  ;;  %v657_v8 = vld [vmem:[%s1002_s1 + $0x24] sm:$0xf]  ;;  %v571_v9 = vld [vmem:[%s1002_s1 + $0x28] sm:$0xf0]  ;;  %v570_v10 = vor.u32 %v658_v6, %v569_v5  ;;  %v561_v12 = vld [vmem:[%s1002_s1 + $0x10] sm:$0xf] }
  0x16   : > { %285 = vmatpush.bf16.msra.mxu0 %v578_v3  ;;  %v574_v11 = vor.u32 %v657_v8, %v571_v9  ;;  %v656_v13 = vld [vmem:[%s1002_s1 + $0x14] sm:$0xf0]  ;;  %v655_v14 = vld [vmem:[%s1002_s1 + $0x14] sm:$0xf]  ;;  %v563_v15 = vld [vmem:[%s1002_s1 + $0x18] sm:$0xf0] }
  0x17   : > { %298 = vmatpush.bf16.msra.mxu1 %v582_v7  ;;  %v668_v16 = vld [vmem:[%s1004_s3 + $0x38] sm:$0xff]  ;;  %v562_v18 = vor.u32 %v656_v13, %v561_v12  ;;  %v553_v19 = vld [vmem:[%s1002_s1] sm:$0xf]  ;;  %s217_s25 = scalar_select %p216_p10, %s832_s22, 1  ;;  %v667_v20 = vld [vmem:[%s1004_s3 + $0x30] sm:$0xff]  ;;  %v566_v21 = vor.u32 %v655_v14, %v563_v15  ;;  %vm277_vm0 = vcmask 523264  }
  0x18   : > { %v676_v17 = vld [vmem:[%s1004_s3 + $0x78] sm:$0xff]  ;;  %443 = vmatpush.bf16.msra.mxu2 %v668_v16  ;;  %v654_v22 = vld [vmem:[%s1002_s1 + $0x4] sm:$0xf0]  ;;  %v653_v23 = vld [vmem:[%s1002_s1 + $0x4] sm:$0xf] }
  0x19   : > { %456 = vmatpush.bf16.msra.mxu3 %v676_v17  ;;  %v675_v24 = vld [vmem:[%s1004_s3 + $0x70] sm:$0xff]  ;;  %v555_v25 = vld [vmem:[%s1002_s1 + $0x8] sm:$0xf0]  ;;  %s550_s14 = sshll.u32 %s217_s25, 3  ;;  %v554_v26 = vor.u32 %v654_v22, %v553_v19  ;;  %v665_v32 = vld [vmem:[%s1004_s3 + $0x20] sm:$0xff] }
  0x1a   : > { %286 = vmatpush.bf16.msra.mxu0 %v570_v10  ;;  %s219_s17 = scalar_lea.vmem %s1001_s0, %s550_s14  ;;  %v666_v28 = vld [vmem:[%s1004_s3 + $0x28] sm:$0xff]  ;;  %v558_v29 = vor.u32 %v653_v23, %v555_v25  ;;  %v673_v33 = vld [vmem:[%s1004_s3 + $0x60] sm:$0xff]  ;;  %v664_v34 = vld [vmem:[%s1004_s3 + $0x18] sm:$0xff]  ;;  %s650_s14 = sshll.u32 %s832_s22, 3 }
  0x1b   : > { %299 = vmatpush.bf16.msra.mxu1 %v574_v11  ;;  %v221_v27 = vld [vmem:[%s219_s17] sm:$0xff]  ;;  %v674_v30 = vld [vmem:[%s1004_s3 + $0x68] sm:$0xff]  ;;  %v672_v35 = vld [vmem:[%s1004_s3 + $0x58] sm:$0xff]  ;;  %s481_s26 = scalar_lea.hbm %s1006_s5, %s650_s14  ;;  %s471_s22 = scalar_lea.sflag [#allocation3], %s213_s12 }
  0x1c   : > { %444 = vmatpush.bf16.msra.mxu2 %v667_v20  ;;  %v222_v31 = vpack.c.bf16 %v221_v27, %v221_v27  ;;  %v663_v36 = vld [vmem:[%s1004_s3 + $0x10] sm:$0xff]  ;;  %v662_v38 = vld [vmem:[%s1004_s3 + $0x8] sm:$0xff]  ;;  %v661_v40 = vld [vmem:[%s1004_s3] sm:$0xff]  ;;  %s485_s25 = sshll.u32 %s481_s26, 4  ;;  %s486_s25 = int_to_ptr.hbm [resolvable:$true] %s485_s25 }
  0x1d   : > { %457 = vmatpush.bf16.msra.mxu3 %v675_v24  ;;  %v671_v37 = vld [vmem:[%s1004_s3 + $0x50] sm:$0xff]  ;;  %v670_v39 = vld [vmem:[%s1004_s3 + $0x48] sm:$0xff]  ;;  %v669_v41 = vld [vmem:[%s1004_s3 + $0x40] sm:$0xff]  ;;  %s731_s7 = sshra.s32 %s486_s25, 4  ;;  %s732_s7 = int_to_ptr.hbm [resolvable:$true] %s731_s7 }
  0x1e   : > { %287 = vmatpush.bf16.msra.mxu0 %v562_v18  ;;  %v231_v42 = vld [vmem:[%s1003_s2] sm:$0x3]  ;;  %s733_s8 = scalar_lea.hbm %s732_s7, 8  ;;  %p738_p0 = scmp.lt.s32.totalorder %s732_s7, %s1006_s5 }
  0x1f   : > { %300 = vmatpush.bf16.msra.mxu1 %v566_v21  ;;  %v233_v43 = vperm.slane %v231_v42, 0  ;;  %v234_v44 = vperm.slane %v231_v42, 1  ;;  %v716_v55 = vld [vmem:[%s1005_s4] ss:$0 sm:$0xff]  ;;  %p734_p11 = scmp.ne.s32.totalorder %s732_s7, %s733_s8  ;;  %p739_p1 = scmp.lt.s32.totalorder %s737_s11, %s733_s8 }
  0x20   : > { %445 = vmatpush.bf16.msra.mxu2 %v666_v28 }
  0x21   : > { %458 = vmatpush.bf16.msra.mxu3 %v674_v30  ;;  %p735_p12 = pnand %p734_p11, %p849_p5  ;;  %p740_p2 = por %p739_p1, %p738_p0 }
  0x22   : > { %288 = vmatpush.bf16.msra.mxu0 %v554_v26 }
  0x23   : > { %301 = vmatpush.bf16.msra.mxu1 %v558_v29  ;;  %p736_p13 = pneg %p735_p12 }
  0x24   : > { %446 = vmatpush.bf16.msra.mxu2 %v665_v32 }
  0x25   : > { %583 = vmatmul.msk.bf16.vlgmr.msra.gmra.mxu0 %vm277_vm0, %v222_v31  ;;  %459 = vmatpush.bf16.msra.mxu3 %v673_v33  ;;  %p741_p3 = pnand %p740_p2, %p736_p13 }
  0x26   : > { %584 = vmatmul.msk.bf16.vlgmr.msra.gmra.mxu1 %vm277_vm0, %v222_v31 }
  0x28   : > { %447 = vmatpush.bf16.msra.mxu2 %v664_v34 }
  0x29   : > { %460 = vmatpush.bf16.msra.mxu3 %v672_v35 }
  0x2c   : > { %448 = vmatpush.bf16.msra.mxu2 %v663_v36 }
  0x2d   : > { %461 = vmatpush.bf16.msra.mxu3 %v671_v37 }
  0x30   : > { %449 = vmatpush.bf16.msra.mxu2 %v662_v38 }
  0x31   : > { %462 = vmatpush.bf16.msra.mxu3 %v670_v39 }
  0x34   : > { %450 = vmatpush.bf16.msra.mxu2 %v661_v40 }
  0x35   : > { %463 = vmatpush.bf16.msra.mxu3 %v669_v41 }
  0xa2   : > { %v290_v45 = vpop.f32.mrf.mxu0 }
  0xa3   : > { %v291_v46 = vadd.f32 %v290_v45, %v233_v43  ;;  %v303_v47 = vpop.f32.mrf.mxu1 }
  0xa4   : > { %v304_v48 = vadd.f32 %v303_v47, %v234_v44 }
  0xa5   : > { %v307_v49 = vmax.f32 %v291_v46, 0.0 }
  0xa6   : > { %v308_v50 = vmax.f32 %v304_v48, 0.0 }
  0xa7   : > { %v309_v51 = vpack.c.bf16 %v307_v49, %v307_v49 }
  0xa8   : > { %v310_v52 = vpack.c.bf16 %v308_v50, %v308_v50 }
  0xa9   : > { %451 = vmatmul.bf16.vlgmr.msra.gmra.mxu2 %v309_v51 }
  0xaa   : > { %464 = vmatmul.bf16.vlgmr.msra.gmra.mxu3 %v310_v52  ;;  %v292_v53 = vpop.f32.mrf.mxu0 }
  0xab   : > { %v305_v54 = vpop.f32.mrf.mxu1 }
 0x12c   : > { %v452_v56 = vpop.f32.mrf.mxu2 }
 0x12d   : > { %v453_v57 = vadd.f32 %v716_v55, %v452_v56  ;;  %v465_v58 = vpop.f32.mrf.mxu3 }
 0x12f   : > { %v466_v59 = vadd.f32 %v465_v58, %v453_v57 }
 0x131   : > { %469 = vst.msk [vmem:[%s215_s30] sm:$0xff] %vm277_vm0, %v466_v59 }
 0x132   : > { %744 = shalt.err (!%p741_p3)
}
 0x133   : > { %677 = dma.vmem_to_hbm [thread:$0]  (%p849_p5), %s484_s6, 128, %s486_s25, %s471_s22  }
 0x134   : > { %v454_v60 = vpop.f32.mrf.mxu2 }
 0x135   : > { %v467_v61 = vpop.f32.mrf.mxu3 }
 0x136 PF: > { %p683_p4 = scmp.ge.s32.totalorder %s779_s21, 2  ;;  %s497_s12 = sand.u32 1, %s767_s18  }
 0x137   : > { %s498_s15 = scalar_lea.sflag [#allocation3], %s497_s12 }
 0x138   : > { %p680_p7 = pnand %p683_p4, %p853_p6 }
 0x13a   : > { %p681_p8 = pneg %p680_p7 }
 0x13c   : > { %762 = dma.done.wait (%p681_p8), %s498_s15, 128  }
 0x13d   : > { %764 = vsyncadd (%p681_p8), %s498_s15, 4294967168  ;;  %p15_p5 = scmp.ge.s32.totalorder %s836_s24, 4   ;;  %s1009_s18 = smov %s771_s19 }
 0x13e   : > { %s1010_s19 = smov %s775_s20  ;;  %s1011_s20 = smov %s847_s27 }
 0x13f   : > { %s1012_s21 = smov %s836_s24  ;;  %17 = sbr.rel (!%p15_p5) target bundleno = 3 (0x3), region = 75 }
 0x144   :  { %504 = vsyncpa [#allocation3], 1 }
 0x145   :  { %506 = vsyncpa [#allocation3 + $0x1], 1 }

</bundles_post_ra>
